<compile_context>
chip_gen: v7x
topology: tpu7x:2x2x1
jax: 0.10.0
libtpu: 0.0.40
codegen_flags: <defaults>
</compile_context>

<pallas_src>
import functools

import numpy as np
import jax
import jax.numpy as jnp
from jax.experimental import pallas as pl
from jax.experimental.pallas import tpu as pltpu

EPS = 1e-5  # nn.BatchNorm2d default eps


def _round_up(v, m):
    return (v + m - 1) // m * m


# ----------------------------------------------------------------------------
# Pallas kernel: one (batch image, row band) tile
# ----------------------------------------------------------------------------
def _tcslbp_kernel(w_pad, xb_ref, mask_ref, scale_ref, shift_ref,
                   w3_ref, w1_ref, b1_ref, o_ref, a_scr):
    # w_pad      : python int, padded row width W + 2
    # xb_ref     : (1, 1, Cp, Q_pad) raw f32 band; channels (padded to Cp) on
    #              sublanes, flattened zero-padded (halo'd) pixels on lanes.
    # mask_ref   : (1, 1, Q_pad) f32   1 on valid pixels, 0 on conv zero-pad
    #              rows/cols and slack lanes (precomputed per band).
    # scale/shift: (Cp, 1) f32  folded BatchNorm affine (global batch stats)
    # w3_ref     : (K, 9*Cp) bf16  fused TCS-LBP 3x3 weights, tap-major
    # w1_ref     : (C, K)  bf16   1x1 conv weight
    # b1_ref     : (C, 1)  f32    1x1 conv bias
    # o_ref      : (1, C, rows_pad) extended-layout output band
    # a_scr      : (9*Cp, rows_pad) bf16 VMEM im2col staging buffer
    xb = xb_ref[0, 0]                                   # (Cp, Q_pad) raw f32
    Cp = xb.shape[0]
    c_out = o_ref.shape[1]
    rows_pad = o_ref.shape[2]

    # --- BatchNorm affine once per element; conv zero-padding re-imposed via
    #     the precomputed mask (raw pad positions hold x == 0, so only the
    #     shift term needs masking) ------------------------------------------
    xn = xb * scale_ref[...] + shift_ref[...] * mask_ref[0]      # (Cp, Q_pad) f32
    xnb = xn.astype(jnp.bfloat16)                                # single cast pass

    # --- im2col: 9 contiguous lane-shifted slices -> sublane-aligned bf16 ----
    for t in range(9):
        dy, dx = divmod(t, 3)
        sh = dy * w_pad + dx
        a_scr[t * Cp:(t + 1) * Cp, :] = xnb[:, sh:sh + rows_pad]

    # --- TCS-LBP 3x3 conv as ONE fused MXU matmul (bf16 in, f32 accumulate) --
    acc = jnp.dot(w3_ref[...], a_scr[...],
                  preferred_element_type=jnp.float32)            # (K, rows_pad)
    y = jnp.maximum(acc, 0.0)                                    # ReLU (f32, VPU)

    # --- 1x1 conv + bias, then residual add (raw center slice of the band) ---
    z = jnp.dot(w1_ref[...], y.astype(jnp.bfloat16),
                preferred_element_type=jnp.float32) + b1_ref[...]  # (C, rows_pad)
    center = w_pad + 1
    o_ref[0] = z + xb[:c_out, center:center + rows_pad]


# ----------------------------------------------------------------------------
# Band-size picker: total-VMEM budget (input x2, output x2, bf16 scratch, temps)
# ----------------------------------------------------------------------------
def _pick_band_rows(N, H, W, C, K, budget_bytes=20 << 20):
    Cp = _round_up(C, 8)
    w_pad = W + 2

    def est(tr):
        rows_p = _round_up(tr * w_pad, 128)
        q_p = _round_up(rows_p + 2 * w_pad + 2, 128)
        return (2 * Cp * q_p * 4            # double-buffered input band
                + 2 * C * rows_p * 4        # double-buffered output band
                + 9 * Cp * rows_p * 2       # bf16 im2col scratch
                + 2 * Cp * q_p * 4          # xn f32 + bf16 temps (headroom)
                + 3 * K * rows_p * 4        # acc / y / y_bf16
                + 2 * C * rows_p * 4)       # z + residual temp

    cands = [tr for tr in range(1, H + 1) if H % tr == 0 and est(tr) <= budget_bytes]
    if not cands:
        return 1
    if N == 1:  # keep >=2 grid steps so both v7x TensorCores get work
        multi = [tr for tr in cands if H // tr >= 2]
        if multi:
            return max(multi)
    return max(cands)


# ----------------------------------------------------------------------------
# Wrapper: BN stats + layout plumbing + pallas_call
# ----------------------------------------------------------------------------
def tcslbp_block_forward(x_nchw, gamma, beta, w3_torch, w1_torch, b1,
                         *, band_rows=None):
    """Forward pass of TCSLBPBlock. x_nchw: (N, C, H, W) float32."""
    N, C, H, W = x_nchw.shape
    K = w3_torch.shape[0]
    Cp = _round_up(C, 8)
    x = x_nchw.astype(jnp.float32)

    # --- BatchNorm2d batch statistics (global over N*H*W), hoisted to JAX ----
    # TODO(synk): BN running-stat updates (training side effect) are not modeled.
    mean = jnp.mean(x, axis=(0, 2, 3))                                  # (C,)
    var = jnp.mean(jnp.square(x - mean.reshape(1, C, 1, 1)), axis=(0, 2, 3))
    scale = gamma.astype(jnp.float32) * jax.lax.rsqrt(var + EPS)        # (C,)
    shift = beta.astype(jnp.float32) - mean * scale                     # (C,)
    scale2 = jnp.pad(scale, (0, Cp - C)).reshape(Cp, 1)
    shift2 = jnp.pad(shift, (0, Cp - C)).reshape(Cp, 1)

    # --- row-band tiling (lane-dense padded widths) ---------------------------
    TR = band_rows or _pick_band_rows(N, H, W, C, K)
    assert H % TR == 0, "band_rows must divide H"
    NB = H // TR
    w_pad = W + 2
    rows = TR * w_pad                                  # valid extended pixels/band
    rows_pad = _round_up(rows, 128)                    # lane-dense output width
    band_len = (TR + 2) * w_pad                        # real band data length
    Q_pad = _round_up(rows_pad + 2 * w_pad + 2, 128)   # lane-dense input width

    # zero-pad H/W by 1 and channels to Cp, gather overlapping (halo'd) bands.
    xp = jnp.pad(x, ((0, 0), (0, Cp - C), (1, 1), (1, 1)))     # (N, Cp, H+2, W+2)
    bands = jnp.stack([xp[:, :, b * TR:b * TR + TR + 2, :] for b in range(NB)],
                      axis=1)                                   # (N, NB, Cp, TR+2, W+2)
    xbands = bands.reshape(N, NB, Cp, band_len)
    xbands = jnp.pad(xbands, ((0, 0), (0, 0), (0, 0), (0, Q_pad - band_len)))

    # precomputed conv-padding mask per band (numpy, static shapes).
    q = np.arange(Q_pad)
    yq, xq = q // w_pad, q % w_pad
    col_ok = (xq >= 1) & (xq <= W) & (q < band_len)
    mask_np = np.zeros((NB, 1, Q_pad), np.float32)
    for b in range(NB):
        row = b * TR + yq
        mask_np[b, 0] = (col_ok & (row >= 1) & (row <= H)).astype(np.float32)
    mask = jnp.asarray(mask_np)

    # --- weight plumbing (bf16 MXU operands; LBP weights are exact in bf16) ---
    # w3f[k, (dy*3+dx)*Cp + c] = w3_torch[k, c, dy, dx]; padded channels = 0.
    w3f = jnp.transpose(w3_torch.astype(jnp.float32), (0, 2, 3, 1))    # (K,3,3,C)
    w3f = jnp.pad(w3f, ((0, 0), (0, 0), (0, 0), (0, Cp - C)))
    w3f = w3f.reshape(K, 9 * Cp).astype(jnp.bfloat16)
    w1m = w1_torch[:, :, 0, 0].astype(jnp.bfloat16)                    # (C, K)
    b1c = b1.reshape(C, 1).astype(jnp.float32)

    kernel = functools.partial(_tcslbp_kernel, w_pad)

    out = pl.pallas_call(
        kernel,
        out_shape=jax.ShapeDtypeStruct((N, C, NB * rows_pad), jnp.float32),
        grid=(N, NB),
        in_specs=[
            pl.BlockSpec((1, 1, Cp, Q_pad), lambda n, b: (n, b, 0, 0)),  # x band
            pl.BlockSpec((1, 1, Q_pad), lambda n, b: (b, 0, 0)),         # pad mask
            pl.BlockSpec((Cp, 1), lambda n, b: (0, 0)),                  # BN scale
            pl.BlockSpec((Cp, 1), lambda n, b: (0, 0)),                  # BN shift
            pl.BlockSpec((K, 9 * Cp), lambda n, b: (0, 0)),              # fused w3
            pl.BlockSpec((C, K), lambda n, b: (0, 0)),                   # w1
            pl.BlockSpec((C, 1), lambda n, b: (0, 0)),                   # b1
        ],
        out_specs=pl.BlockSpec((1, C, rows_pad), lambda n, b: (n, 0, b)),
        scratch_shapes=[pltpu.VMEM((9 * Cp, rows_pad), jnp.bfloat16)],
        compiler_params=pltpu.CompilerParams(
            dimension_semantics=("parallel", "parallel"),
            vmem_limit_bytes=48 * 1024 * 1024),
    )(xbands, mask, scale2, shift2, w3f, w1m, b1c)

    # transpose-free epilogue: drop padded lanes / garbage columns, restore NCHW
    out = out.reshape(N, C, NB, rows_pad)[:, :, :, :rows]
    out = out.reshape(N, C, NB, TR, w_pad)[..., :W]
    return out.reshape(N, C, H, W)


# ----------------------------------------------------------------------------
# Deterministic parameter construction (replicates ConvTCSLBP.__init__ logic)
# ----------------------------------------------------------------------------
def make_tcslbp_weights(c_in, c_out, k=3,
                        threshold=(1.0, 0.5, 0.75, 0.25), seed=0):
    rng = np.random.RandomState(seed)
    w = np.zeros((c_out, c_in, k * k), dtype=np.float32)
    index1 = np.array([0, 1, 2, 3, 5, 6, 7, 8])
    for ip in range(1, c_in):
        rng.shuffle(index1)
        for op in range(1, c_out):
            tidx = rng.randint(0, len(threshold))
            r1 = rng.randint(1, 8)
            w[op, ip, index1[r1]] = threshold[tidx]
            w[op, ip, 8 - index1[r1]] = -threshold[tidx]
    return w.reshape(c_out, c_in, k, k)


# ----------------------------------------------------------------------------
# Pure-JAX reference (correctness check)
# ----------------------------------------------------------------------------
def reference_forward(x, gamma, beta, w3_torch, w1_torch, b1):
    mean = jnp.mean(x, axis=(0, 2, 3), keepdims=True)
    var = jnp.mean((x - mean) ** 2, axis=(0, 2, 3), keepdims=True)
    xn = ((x - mean) * jax.lax.rsqrt(var + EPS)
          * gamma.reshape(1, -1, 1, 1) + beta.reshape(1, -1, 1, 1))
    y = jax.lax.conv_general_dilated(
        xn, w3_torch, (1, 1), ((1, 1), (1, 1)),
        dimension_numbers=('NCHW', 'OIHW', 'NCHW'))
    y = jnp.maximum(y, 0.0)
    z = jax.lax.conv_general_dilated(
        y, w1_torch, (1, 1), 'VALID',
        dimension_numbers=('NCHW', 'OIHW', 'NCHW'))
    z = z + b1.reshape(1, -1, 1, 1)
    return z + x


# ----------------------------------------------------------------------------
if __name__ == "__main__":
    numChannels, numWeights = 4, 8
    N, H, W = 2, 16, 16

    key = jax.random.PRNGKey(0)
    kx, kg, kb, kw1, kb1 = jax.random.split(key, 5)

    x = jax.random.normal(kx, (N, numChannels, H, W), jnp.float32)

    # BatchNorm affine params (deterministic; defaults would be ones/zeros)
    gamma = 1.0 + 0.1 * jax.random.normal(kg, (numChannels,), jnp.float32)
    beta = 0.1 * jax.random.normal(kb, (numChannels,), jnp.float32)

    # TCS-LBP fixed binary-style conv weights (K, C, 3, 3)
    w3 = jnp.asarray(make_tcslbp_weights(numChannels, numWeights))

    # 1x1 conv params (C_out=numChannels, C_in=numWeights)
    lim = 1.0 / np.sqrt(numWeights)
    w1 = jax.random.uniform(kw1, (numChannels, numWeights, 1, 1),
                            jnp.float32, -lim, lim)
    b1 = jax.random.uniform(kb1, (numChannels,), jnp.float32, -lim, lim)

    ref = reference_forward(x, gamma, beta, w3, w1, b1)

    # band_rows=4 -> grid=(2, 4): exercises first / middle / last band masks
    out = tcslbp_block_forward(x, gamma, beta, w3, w1, b1, band_rows=4)
    out = jax.block_until_ready(out)
    np.testing.assert_allclose(np.asarray(out), np.asarray(ref),
                               rtol=2e-2, atol=2e-2)

    # default band picker (single full-height band here)
    out2 = tcslbp_block_forward(x, gamma, beta, w3, w1, b1)
    out2 = jax.block_until_ready(out2)
    np.testing.assert_allclose(np.asarray(out2), np.asarray(ref),
                               rtol=2e-2, atol=2e-2)

    print("KERNEL_OK")
</pallas_src>

<mosaic_0001>
module attributes {stable_mosaic.version = 11 : i64} {
  func.func @_tcslbp_kernel(%arg0: i32, %arg1: i32, %arg2: memref<1x1x8x256xf32, #tpu.memory_space<vmem>>, %arg3: memref<1x1x256xf32, #tpu.memory_space<vmem>>, %arg4: memref<8x1xf32, #tpu.memory_space<vmem>>, %arg5: memref<8x1xf32, #tpu.memory_space<vmem>>, %arg6: memref<8x72xbf16, #tpu.memory_space<vmem>>, %arg7: memref<4x8xbf16, #tpu.memory_space<vmem>>, %arg8: memref<4x1xf32, #tpu.memory_space<vmem>>, %arg9: memref<1x4x128xf32, #tpu.memory_space<vmem>>, %arg10: memref<72x128xbf16, #tpu.memory_space<vmem>>) attributes {dimension_semantics = [#tpu.dimension_semantics<parallel>, #tpu.dimension_semantics<parallel>], iteration_bounds = array<i64: 2, 4>, scalar_prefetch = 0 : i64, scratch_operands = 1 : i64, tpu.core_type = #tpu.core_type<tc>, window_params = [{transform_indices = @transform_0, window_bounds = array<i64: 1, 1, 8, 256>}, {transform_indices = @transform_1, window_bounds = array<i64: 1, 1, 256>}, {pipeline_mode = #tpu.pipeline_mode<synchronous>, transform_indices = @transform_2, window_bounds = array<i64: 8, 1>}, {pipeline_mode = #tpu.pipeline_mode<synchronous>, transform_indices = @transform_3, window_bounds = array<i64: 8, 1>}, {pipeline_mode = #tpu.pipeline_mode<synchronous>, transform_indices = @transform_4, window_bounds = array<i64: 8, 72>}, {pipeline_mode = #tpu.pipeline_mode<synchronous>, transform_indices = @transform_5, window_bounds = array<i64: 4, 8>}, {pipeline_mode = #tpu.pipeline_mode<synchronous>, transform_indices = @transform_6, window_bounds = array<i64: 4, 1>}, {transform_indices = @transform_7, window_bounds = array<i64: 1, 4, 128>}]} {
    %c0 = arith.constant 0 : index
    %c0_0 = arith.constant 0 : index
    %c0_1 = arith.constant 0 : index
    %c0_2 = arith.constant 0 : index
    %0 = vector.load %arg2[%c0, %c0_0, %c0_1, %c0_2] : memref<1x1x8x256xf32, #tpu.memory_space<vmem>>, vector<1x1x8x256xf32>
    %1 = vector.shape_cast %0 : vector<1x1x8x256xf32> to vector<8x256xf32>
    %c0_3 = arith.constant 0 : index
    %c0_4 = arith.constant 0 : index
    %2 = vector.load %arg4[%c0_3, %c0_4] : memref<8x1xf32, #tpu.memory_space<vmem>>, vector<8x1xf32>
    %3 = vector.broadcast %2 : vector<8x1xf32> to vector<8x256xf32>
    %4 = arith.mulf %1, %3 : vector<8x256xf32>
    %c0_5 = arith.constant 0 : index
    %c0_6 = arith.constant 0 : index
    %5 = vector.load %arg5[%c0_5, %c0_6] : memref<8x1xf32, #tpu.memory_space<vmem>>, vector<8x1xf32>
    %c0_7 = arith.constant 0 : index
    %c0_8 = arith.constant 0 : index
    %c0_9 = arith.constant 0 : index
    %6 = vector.load %arg3[%c0_7, %c0_8, %c0_9] : memref<1x1x256xf32, #tpu.memory_space<vmem>>, vector<1x1x256xf32>
    %7 = vector.shape_cast %6 : vector<1x1x256xf32> to vector<1x256xf32>
    %8 = vector.broadcast %5 : vector<8x1xf32> to vector<8x256xf32>
    %9 = vector.broadcast %7 : vector<1x256xf32> to vector<8x256xf32>
    %10 = arith.mulf %8, %9 : vector<8x256xf32>
    %11 = arith.addf %4, %10 : vector<8x256xf32>
    %12 = arith.truncf %11 : vector<8x256xf32> to vector<8x256xbf16>
    %13 = vector.extract_strided_slice %12 {offsets = [0, 0], sizes = [8, 128], strides = [1, 1]} : vector<8x256xbf16> to vector<8x128xbf16>
    %c0_10 = arith.constant 0 : index
    %c0_11 = arith.constant 0 : index
    %14 = vector.load %arg10[%c0_10, %c0_11] : memref<72x128xbf16, #tpu.memory_space<vmem>>, vector<8x128xbf16>
    tpu.vector_store %arg10[%c0_10, %c0_11], %13 {strides = array<i32>} : memref<72x128xbf16, #tpu.memory_space<vmem>>, vector<8x128xbf16>,
    %15 = vector.extract_strided_slice %12 {offsets = [0, 1], sizes = [8, 128], strides = [1, 1]} : vector<8x256xbf16> to vector<8x128xbf16>
    %c8 = arith.constant 8 : index
    %c0_12 = arith.constant 0 : index
    %16 = vector.load %arg10[%c8, %c0_12] : memref<72x128xbf16, #tpu.memory_space<vmem>>, vector<8x128xbf16>
    tpu.vector_store %arg10[%c8, %c0_12], %15 {strides = array<i32>} : memref<72x128xbf16, #tpu.memory_space<vmem>>, vector<8x128xbf16>,
    %17 = vector.extract_strided_slice %12 {offsets = [0, 2], sizes = [8, 128], strides = [1, 1]} : vector<8x256xbf16> to vector<8x128xbf16>
    %c16 = arith.constant 16 : index
    %c0_13 = arith.constant 0 : index
    %18 = vector.load %arg10[%c16, %c0_13] : memref<72x128xbf16, #tpu.memory_space<vmem>>, vector<8x128xbf16>
    tpu.vector_store %arg10[%c16, %c0_13], %17 {strides = array<i32>} : memref<72x128xbf16, #tpu.memory_space<vmem>>, vector<8x128xbf16>,
    %19 = vector.extract_strided_slice %12 {offsets = [0, 18], sizes = [8, 128], strides = [1, 1]} : vector<8x256xbf16> to vector<8x128xbf16>
    %c24 = arith.constant 24 : index
    %c0_14 = arith.constant 0 : index
    %20 = vector.load %arg10[%c24, %c0_14] : memref<72x128xbf16, #tpu.memory_space<vmem>>, vector<8x128xbf16>
    tpu.vector_store %arg10[%c24, %c0_14], %19 {strides = array<i32>} : memref<72x128xbf16, #tpu.memory_space<vmem>>, vector<8x128xbf16>,
    %21 = vector.extract_strided_slice %12 {offsets = [0, 19], sizes = [8, 128], strides = [1, 1]} : vector<8x256xbf16> to vector<8x128xbf16>
    %c32 = arith.constant 32 : index
    %c0_15 = arith.constant 0 : index
    %22 = vector.load %arg10[%c32, %c0_15] : memref<72x128xbf16, #tpu.memory_space<vmem>>, vector<8x128xbf16>
    tpu.vector_store %arg10[%c32, %c0_15], %21 {strides = array<i32>} : memref<72x128xbf16, #tpu.memory_space<vmem>>, vector<8x128xbf16>,
    %23 = vector.extract_strided_slice %12 {offsets = [0, 20], sizes = [8, 128], strides = [1, 1]} : vector<8x256xbf16> to vector<8x128xbf16>
    %c40 = arith.constant 40 : index
    %c0_16 = arith.constant 0 : index
    %24 = vector.load %arg10[%c40, %c0_16] : memref<72x128xbf16, #tpu.memory_space<vmem>>, vector<8x128xbf16>
    tpu.vector_store %arg10[%c40, %c0_16], %23 {strides = array<i32>} : memref<72x128xbf16, #tpu.memory_space<vmem>>, vector<8x128xbf16>,
    %25 = vector.extract_strided_slice %12 {offsets = [0, 36], sizes = [8, 128], strides = [1, 1]} : vector<8x256xbf16> to vector<8x128xbf16>
    %c48 = arith.constant 48 : index
    %c0_17 = arith.constant 0 : index
    %26 = vector.load %arg10[%c48, %c0_17] : memref<72x128xbf16, #tpu.memory_space<vmem>>, vector<8x128xbf16>
    tpu.vector_store %arg10[%c48, %c0_17], %25 {strides = array<i32>} : memref<72x128xbf16, #tpu.memory_space<vmem>>, vector<8x128xbf16>,
    %27 = vector.extract_strided_slice %12 {offsets = [0, 37], sizes = [8, 128], strides = [1, 1]} : vector<8x256xbf16> to vector<8x128xbf16>
    %c56 = arith.constant 56 : index
    %c0_18 = arith.constant 0 : index
    %28 = vector.load %arg10[%c56, %c0_18] : memref<72x128xbf16, #tpu.memory_space<vmem>>, vector<8x128xbf16>
    tpu.vector_store %arg10[%c56, %c0_18], %27 {strides = array<i32>} : memref<72x128xbf16, #tpu.memory_space<vmem>>, vector<8x128xbf16>,
    %29 = vector.extract_strided_slice %12 {offsets = [0, 38], sizes = [8, 128], strides = [1, 1]} : vector<8x256xbf16> to vector<8x128xbf16>
    %c64 = arith.constant 64 : index
    %c0_19 = arith.constant 0 : index
    %30 = vector.load %arg10[%c64, %c0_19] : memref<72x128xbf16, #tpu.memory_space<vmem>>, vector<8x128xbf16>
    tpu.vector_store %arg10[%c64, %c0_19], %29 {strides = array<i32>} : memref<72x128xbf16, #tpu.memory_space<vmem>>, vector<8x128xbf16>,
    %c0_20 = arith.constant 0 : index
    %c0_21 = arith.constant 0 : index
    %31 = vector.load %arg6[%c0_20, %c0_21] : memref<8x72xbf16, #tpu.memory_space<vmem>>, vector<8x72xbf16>
    %c0_22 = arith.constant 0 : index
    %c0_23 = arith.constant 0 : index
    %32 = vector.load %arg10[%c0_22, %c0_23] : memref<72x128xbf16, #tpu.memory_space<vmem>>, vector<72x128xbf16>
    %cst = arith.constant dense<0.000000e+00> : vector<8x128xf32>
    %33 = tpu.matmul %31, %32, %cst {dimension_numbers = #tpu.dot_dimension_numbers<[1], [0], [0], [1], [0, 0, 1, 1], [], []>} : vector<8x72xbf16>, vector<72x128xbf16>, vector<8x128xf32> -> vector<8x128xf32>
    %cst_24 = arith.constant 0.000000e+00 : f32
    %34 = vector.broadcast %cst_24 : f32 to vector<8x128xf32>
    %35 = arith.maximumf %33, %34 : vector<8x128xf32>
    %c0_25 = arith.constant 0 : index
    %c0_26 = arith.constant 0 : index
    %36 = vector.load %arg7[%c0_25, %c0_26] : memref<4x8xbf16, #tpu.memory_space<vmem>>, vector<4x8xbf16>
    %37 = arith.truncf %35 : vector<8x128xf32> to vector<8x128xbf16>
    %cst_27 = arith.constant dense<0.000000e+00> : vector<4x128xf32>
    %38 = tpu.matmul %36, %37, %cst_27 {dimension_numbers = #tpu.dot_dimension_numbers<[1], [0], [0], [1], [0, 0, 1, 1], [], []>} : vector<4x8xbf16>, vector<8x128xbf16>, vector<4x128xf32> -> vector<4x128xf32>
    %c0_28 = arith.constant 0 : index
    %c0_29 = arith.constant 0 : index
    %39 = vector.load %arg8[%c0_28, %c0_29] : memref<4x1xf32, #tpu.memory_space<vmem>>, vector<4x1xf32>
    %40 = vector.broadcast %39 : vector<4x1xf32> to vector<4x128xf32>
    %41 = arith.addf %38, %40 : vector<4x128xf32>
    %42 = vector.extract_strided_slice %1 {offsets = [0, 19], sizes = [4, 128], strides = [1, 1]} : vector<8x256xf32> to vector<4x128xf32>
    %43 = arith.addf %41, %42 : vector<4x128xf32>
    %c0_30 = arith.constant 0 : index
    %c0_31 = arith.constant 0 : index
    %c0_32 = arith.constant 0 : index
    %44 = vector.load %arg9[%c0_30, %c0_31, %c0_32] : memref<1x4x128xf32, #tpu.memory_space<vmem>>, vector<1x4x128xf32>
    %45 = vector.shape_cast %44 : vector<1x4x128xf32> to vector<4x128xf32>
    %46 = vector.shape_cast %43 : vector<4x128xf32> to vector<1x4x128xf32>
    tpu.vector_store %arg9[%c0_30, %c0_31, %c0_32], %46 {strides = array<i32>} : memref<1x4x128xf32, #tpu.memory_space<vmem>>, vector<1x4x128xf32>,
    return
  }
  func.func @transform_0(%arg0: i32, %arg1: i32) -> (i32, i32, i32, i32) {
    %c0_i32 = arith.constant 0 : i32
    %c0_i32_0 = arith.constant 0 : i32
    %c0_i32_1 = arith.constant 0 : i32
    return %arg0, %arg1, %c0_i32, %c0_i32_0 : i32, i32, i32, i32
  }
  func.func @transform_1(%arg0: i32, %arg1: i32) -> (i32, i32, i32) {
    %c0_i32 = arith.constant 0 : i32
    %c0_i32_0 = arith.constant 0 : i32
    %c0_i32_1 = arith.constant 0 : i32
    return %arg1, %c0_i32, %c0_i32_0 : i32, i32, i32
  }
  func.func @transform_2(%arg0: i32, %arg1: i32) -> (i32, i32) {
    %c0_i32 = arith.constant 0 : i32
    %c0_i32_0 = arith.constant 0 : i32
    %c0_i32_1 = arith.constant 0 : i32
    return %c0_i32, %c0_i32_0 : i32, i32
  }
  func.func @transform_3(%arg0: i32, %arg1: i32) -> (i32, i32) {
    %c0_i32 = arith.constant 0 : i32
    %c0_i32_0 = arith.constant 0 : i32
    %c0_i32_1 = arith.constant 0 : i32
    return %c0_i32, %c0_i32_0 : i32, i32
  }
  func.func @transform_4(%arg0: i32, %arg1: i32) -> (i32, i32) {
    %c0_i32 = arith.constant 0 : i32
    %c0_i32_0 = arith.constant 0 : i32
    %c0_i32_1 = arith.constant 0 : i32
    return %c0_i32, %c0_i32_0 : i32, i32
  }
  func.func @transform_5(%arg0: i32, %arg1: i32) -> (i32, i32) {
    %c0_i32 = arith.constant 0 : i32
    %c0_i32_0 = arith.constant 0 : i32
    %c0_i32_1 = arith.constant 0 : i32
    return %c0_i32, %c0_i32_0 : i32, i32
  }
  func.func @transform_6(%arg0: i32, %arg1: i32) -> (i32, i32) {
    %c0_i32 = arith.constant 0 : i32
    %c0_i32_0 = arith.constant 0 : i32
    %c0_i32_1 = arith.constant 0 : i32
    return %c0_i32, %c0_i32_0 : i32, i32
  }
  func.func @transform_7(%arg0: i32, %arg1: i32) -> (i32, i32, i32) {
    %c0_i32 = arith.constant 0 : i32
    %c0_i32_0 = arith.constant 0 : i32
    return %arg0, %c0_i32, %arg1 : i32, i32, i32
  }
}

</mosaic_0001>

<bundles_post_ra>
// kernel: tpu_custom_call.1
= control target key start
LH: loop header
LB: loop body
LE: loop exit
PB: predicated region body
PF: predicated region fallthrough
CT: control target
= control target key end

     0   :  { %s1250_s0 = inlined_call_operand.hbm [shape: f32[2,4,8,256], index: 0, kind: input, shape index: {}]   ;;  %s1251_s1 = inlined_call_operand.vmem [shape: f32[4,1,256], index: 1, kind: input, shape index: {}]   ;;  %s1252_s2 = inlined_call_operand.vmem [shape: f32[8,1], index: 2, kind: input, shape index: {}]   ;;  %s1253_s3 = inlined_call_operand.vmem [shape: f32[8,1], index: 3, kind: input, shape index: {}]   ;;  %s1254_s4 = inlined_call_operand.vmem [shape: bf16[8,72], index: 4, kind: input, shape index: {}]   ;;  %s1255_s5 = inlined_call_operand.vmem [shape: bf16[4,8], index: 5, kind: input, shape index: {}]   ;;  %s1256_s6 = inlined_call_operand.vmem [shape: f32[4,1], index: 6, kind: input, shape index: {}]   ;;  %s1257_s7 = inlined_call_operand.hbm [shape: f32[2,4,512], index: 7, kind: output, shape index: {}]  }
   0x1   :  { %1263 = sst [smem:[#allocation12_spill]] %s1257_s7 }
   0x2   :  { %12 = vsyncpa [#allocation4], 0 }
   0x3   :  { %14 = vsyncpa [#allocation4 + $0x1], 0 }
   0x4   :  { %15 = vsyncpa [#allocation5], 0 }
   0x5   :  { %17 = vsyncpa [#allocation5 + $0x1], 0  ;;  %s1025_s24 = smov 0   ;;  %s1027_s25 = smov 0  }
   0x6   :  { %s1029_s26 = smov 0   ;;  %s1031_s27 = smov 0  }
   0x7   :  { %s1033_s28 = smov 0   ;;  %s1035_s29 = smov 0  }
   0x8   :  { %s1037_s30 = smov 0   ;;  %s1039_s8 = smov 0  }
   0x9 LB: > { %1264 = sst [smem:[#allocation9_spill]] %s942_s24  ;;  %s693_s9 = sadd.s32 4294967295, %s970_s8   ;;  %s970_s8 = sphi %s1039_s8, %s23_s8   ;;  %s966_s30 = sphi %s1037_s30, %s1286_s30   ;;  %s962_s29 = sphi %s1035_s29, %s1285_s29   ;;  %s958_s28 = sphi %s1033_s28, %s1284_s28   ;;  %s954_s27 = sphi %s1031_s27, %s1283_s27   ;;  %s950_s26 = sphi %s1029_s26, %s1282_s26   ;;  %s946_s25 = sphi %s1027_s25, %s1281_s25   ;;  %s942_s24 = sphi %s1025_s24, %s1280_s24  }
   0xa   : > { %s694_s10 = sadd.s32 4294967294, %s970_s8   ;;  %s32_s11 = sadd.s32 1, %s962_s29 }
   0xb   : > { %s35_s12 = sadd.s32 1, %s966_s30  ;;  %p33_p0 = scmp.ge.s32.totalorder %s32_s11, 4 }
   0xc   : > { %s44_s13 = sadd.s32 1, %s950_s26  ;;  %p51_p1 = scmp.ne.s32.totalorder %s950_s26, %s946_s25 }
   0xd   : > { %p52_p2 = scmp.eq.s32.totalorder %s970_s8, 0  ;;  %s1288_s11 = smov (%p33_p0, %s32_s11), 0 }
   0xe   : > { %1265 = sst [smem:[#allocation10_spill]] %s1288_s11  ;;  %s1290_s12 = smov (!%p33_p0, %s35_s12), %s966_s30 }
   0xf   : > { %s40_s14 = ssub.s32 %s962_s29, %s1288_s11  ;;  %p1078_p3 = por %p52_p2, %p51_p1 }
  0x10   : > { %p37_p4 = scmp.ge.s32.totalorder %s1290_s12, 2  ;;  %p57_p5 = scmp.ne.s32.totalorder %s946_s25, %s942_s24 }
  0x11   : > { %p58_p6 = scmp.eq.s32.totalorder %s693_s9, 0  ;;  %p214_p7 = scmp.eq.s32.totalorder %s693_s9, 7 }
  0x12   : > { %s1292_s12 = smov (%p37_p4, %s1290_s12), 0  ;;  %p220_p10 = scmp.eq.s32.totalorder %s694_s10, 7 }
  0x13   : > { %1267 = sst [smem:[#allocation11_spill]] %s1292_s12  ;;  %p1086_p8 = por %p58_p6, %p57_p5 }
  0x14   : > { %p1090_p9 = por %p214_p7, %p51_p1  ;;  %s39_s18 = ssub.s32 %s966_s30, %s1292_s12 }
  0x15   : > { %s41_s19 = sor.u32 %s40_s14, %s39_s18  ;;  %p1096_p12 = por %p220_p10, %p57_p5 }
  0x16   : > { %s1269_s17 = scalar_select %p1090_p9, 1, 0 }
  0x17   : > { %p42_p11 = scmp.eq.s32.totalorder %s41_s19, 0  ;;  %p759_p13 = scmp.lt.s32.totalorder %s970_s8, 8 }
  0x18   : > { %s1270_s20 = scalar_select %p1096_p12, 1, 0 }
  0x19   : > { %s255_s21 = sand.u32 1, %s950_s26   ;;  %s698_s9 = sshll.u32 %s962_s29, 1 }
  0x1a   : > { %s1103_s22 = scalar_select %p42_p11, %s950_s26, %s44_s13  }
  0x1b   : > { %s697_s23 = sshll.u32 %s255_s21, 4  ;;  %s699_s11 = sshll.u32 %s966_s30, 3 }
  0x1c   : > { %s259_s24 = scalar_lea.vmem [#allocation3], %s697_s23  ;;  %s265_s12 = sadd.s32 %s699_s11, %s698_s9 }
  0x1d   : > { %s269_s7 = sshll.u32 %s259_s24, 4  ;;  %s700_s10 = sshll.u32 %s265_s12, 7  ;;  %s1107_s7 = int_to_ptr.vmem [resolvable:$true] %s269_s7 }
  0x1e   : > { %p1111_p0 = pnand %p759_p13, %p1078_p3  ;;  %s1118_s13 = scalar_lea.hbm %s1250_s0, %s700_s10 }
  0x1f   : > { %s256_s24 = scalar_lea.sflag [#allocation4], %s255_s21  ;;  %s842_s11 = scalar_lea.hbm %s1118_s13, 256 }
  0x20   : > { %p843_p4 = scmp.ne.s32.totalorder %s1118_s13, %s842_s11  ;;  %p844_p3 = pneg %p1111_p0 }
  0x21   : > { %s847_s23 = scalar_lea.hbm %s1250_s0, 2048  ;;  %p848_p7 = scmp.lt.u32.totalorder %s1118_s13, %s1250_s0 }
  0x22   : > { %p845_p5 = pnand %p844_p3, %p843_p4  ;;  %p849_p10 = scmp.lt.u32.totalorder %s847_s23, %s842_s11 }
  0x23   : > { %p851_p13 = scmp.lt.u32.totalorder %s842_s11, %s1118_s13 }
  0x24   : > { %p846_p6 = pneg %p845_p5  ;;  %p850_p11 = por %p849_p10, %p848_p7 }
  0x26   : > { %p852_p1 = por %p851_p13, %p850_p11 }
  0x28   : > { %p853_p2 = pnand %p852_p1, %p846_p6 }
  0x2a   : > { %856 = shalt.err (!%p853_p2)
}
  0x2b   : > { %s857_s21 = scalar_lea.vmem %s1107_s7, 256  ;;  %s972_s18 = smov [#allocation3]  }
  0x2c   : > { %p858_p4 = scmp.ne.s32.totalorder %s1107_s7, %s857_s21  ;;  %s862_s19 = sshll.u32 %s972_s18, 4  ;;  %s863_s19 = int_to_ptr.vmem [resolvable:$false] %s862_s19 }
  0x2d   : > { %s864_s12 = scalar_lea.vmem %s863_s19, 512  ;;  %p865_p9 = scmp.lt.s32.totalorder %s1107_s7, %s863_s19 }
  0x2e   : > { %p860_p5 = pnand %p858_p4, %p844_p3  ;;  %p866_p7 = scmp.lt.s32.totalorder %s864_s12, %s857_s21 }
  0x30   : > { %p861_p12 = pneg %p860_p5  ;;  %p867_p10 = por %p866_p7, %p865_p9 }
  0x32   : > { %p868_p11 = pnand %p867_p10, %p861_p12 }
  0x34   : > { %871 = shalt.err (!%p868_p11)
}
  0x35   : > { %754 = dma.hbm_to_vmem [thread:$0]  (!%p1111_p0), %s1118_s13, 256, %s1107_s7, %s256_s24  }
  0x36   : > { %p1272_p1 = scmp.lt.s32.totalorder %s970_s8, 9  ;;  %p1273_p2 = scmp.ge.s32.totalorder %s970_s8, 1 }
  0x38   : > { %p282_p3 = pnand %p1273_p2, %p1272_p1 }
  0x39   : > { %s1152_s11 = sand.u32 (!%p282_p3), 1, %s946_s25  }
  0x3a   : > { %285 = sbr.rel (%p282_p3) target bundleno = 802 (0x322), region = 48  ;;  %s702_s15 = sshll.u32 (!%p282_p3), %s1152_s11, 4 }
  0x3b   : > { %s288_s23 = scalar_lea.sflag (!%p282_p3), [#allocation4], %s1152_s11  ;;  %s291_s9 = scalar_lea.vmem (!%p282_p3), [#allocation3], %s702_s15 }
  0x41   : > { %933 = dma.done.wait (%p1086_p8), %s288_s23, 256  }
  0x42   : > { %935 = vsyncadd (%p1086_p8), %s288_s23, 4294967040  ;;  %v973_v0 = vmov 0   ;;  %v333_v1 = vld [vmem:[%s1252_s2] sm:$0xff]  ;;  %p326_p9 = scmp.lt.s32.totalorder %s954_s27, 3  ;;  %v349_v3 = vlaneseq  ;;  %v974_v22 = vmov 0.0   ;;  %s975_s12 = smov 110  }
  0x43   : > { %836 = vset.pattern.permute.xlu0 %v973_v0  ;;  %v341_v2 = vld [vmem:[%s1253_s3] sm:$0xff]  ;;  %727 = vmatprep.subr.bf16.mxu0 %v974_v22  ;;  %s976_s15 = smov 127   ;;  %s977_s23 = smov 108   ;;  %vm983_vm0 = vmmov 0   ;;  %vm388_vm1 = vcmask 900096   ;;  %vm374_vm2 = vcmask 1039360  }
  0x44   : > { %336 = vperm.xlu0 %836, %v333_v1   ;;  %s327_s10 = scalar_select %p326_p9, %s954_s27, 3  ;;  %v350_v4 = vshrl.u32 %v349_v3, 7  ;;  %v331_v11 = vld [vmem:[%s291_s9] sm:$0xff]  ;;  %v332_v12 = vld [vmem:[%s291_s9 + $0x8] sm:$0xff]  ;;  %741 = vmatprep.subr.bf16.mxu1 %v974_v22  ;;  %vm402_vm3 = vcmask 883712   ;;  %vm381_vm4 = vcmask 1031168  }
  0x45   : > { %s978_s9 = smov 126   ;;  %s979_s7 = smov 91   ;;  %v515_v23 = vld [vmem:[%s1256_s6] sm:$0xf]  ;;  %737 = vmatprep.mubr.msk.bf16.mxu0 %vm983_vm0, %v974_v22  ;;  %743 = vmatprep.mubr.msk.bf16.mxu1 %vm983_vm0, %v974_v22  ;;  %vm416_vm5 = vcmask 744448   ;;  %vm395_vm6 = vcmask 891904  }
  0x46   : > { %s704_s21 = sshll.u32 %s327_s10, 1  ;;  %v351_v5 = vsub.s32 0, %v350_v4  ;;  %v355_v6 = vsub.s32 1, %v350_v4  ;;  %s980_s14 = smov 109   ;;  %vm409_vm7 = vcmask 752640   ;;  %vm423_vm8 = vcmask 736256  }
  0x47   : > { %s329_s19 = scalar_lea.vmem %s1251_s1, %s704_s21  ;;  %s981_s10 = smov 92   ;;  %vm468_vm9 = vcmask 1043456   ;;  %v427_v54 = vld [vmem:[%s1254_s4] sm:$0xf]  ;;  %vm464_vm10 = vcmask 588800   ;;  %vm521_vm11 = vcmask 64512  }
  0x48   : > { %345 = vperm.xlu0 %836, %v341_v2   ;;  %v342_v7 = vld [vmem:[%s329_s19] sm:$0x3]  ;;  %s982_s21 = smov 90   ;;  %p1275_p12 = scmp.ne.s32.totalorder %s1269_s17, 0 }
  0x49   : > { %v352_v9 = vrot.slane %v342_v7, %v351_v5  ;;  %v356_v10 = vrot.slane %v342_v7, %v355_v6  ;;  %v513_v62 = vld [vmem:[%s1255_s5] sm:$0x3]  ;;  %s984_s18 = smov [#allocation6]  }
  0x4a   : > { %s876_s19 = sshll.u32 %s984_s18, 4  ;;  %s877_s19 = int_to_ptr.vmem [resolvable:$false] %s876_s19 }
  0xc3   : > { %v337_v8 = vpop.permute.xlu0 %336 }
  0xc4   : > { %v339_v14 = vmul.f32 %v337_v8, %v331_v11  ;;  %v340_v15 = vmul.f32 %v337_v8, %v332_v12 }
  0xc7   : > { %v346_v13 = vpop.permute.xlu0 %345 }
  0xc8   : > { %v359_v16 = vmul.f32 %v352_v9, %v346_v13  ;;  %v360_v17 = vmul.f32 %v356_v10, %v346_v13 }
  0xca   : > { %v361_v18 = vadd.f32 %v359_v16, %v339_v14  ;;  %v362_v19 = vadd.f32 %v360_v17, %v340_v15 }
  0xcc   : > { %v363_v20 = vpack.c.bf16 %v361_v18, %v361_v18  ;;  %v718_v21 = vpack.c.bf16 %v362_v19, %v361_v18 }
  0xce   : > { %365 = vst [vmem:[#allocation2] sm:$0xf] %v363_v20  ;;  %385 = vrot.lane.b32.xlu0 %v718_v21, %s975_s12  ;;  %371 = vrot.lane.b32.xlu1 %v718_v21, %s976_s15  ;;  %s703_s15 = sshll.u32 %s1152_s11, 2  ;;  %s878_s12 = scalar_lea.vmem %s877_s19, 128 }
  0xd2   : > { %399 = vrot.lane.b32.xlu0 %v718_v21, %s977_s23  ;;  %378 = vrot.lane.b32.xlu1 %v718_v21, %s978_s9  ;;  %s714_s23 = sshll.u32 %s958_s28, 2 }
  0xd3   : > { %s591_s9 = sadd.s32 %s954_s27, %s714_s23  ;;  %s580_s27 = scalar_lea.sflag [#allocation5], %s1152_s11 }
  0xd6   : > { %413 = vrot.lane.b32.xlu0 %v718_v21, %s979_s7  ;;  %392 = vrot.lane.b32.xlu1 %v718_v21, %s980_s14  ;;  %s715_s7 = sshll.u32 %s591_s9, 6 }
  0xda   : > { %518 = vperm.xlu0 %836, %v515_v23   ;;  %406 = vrot.lane.b32.xlu1 %v718_v21, %s981_s10 }
  0xde   : > { %420 = vrot.lane.b32.xlu1 %v718_v21, %s982_s21  ;;  %572 = vrot.lane.b32.xlu0 %v332_v12, %s980_s14  ;;  %s1274_s21 = sld [smem:[#allocation12_spill]] }
  0xe2   : > { %570 = vrot.lane.b32.xlu1 %v331_v11, %s980_s14  ;;  %s325_s14 = scalar_lea.vmem [#allocation6], %s703_s15 }
  0xe3   : > { %s595_s13 = sshll.u32 %s325_s14, 4  ;;  %s1198_s13 = int_to_ptr.vmem [resolvable:$true] %s595_s13 }
  0xe4   : > { %s1196_s28 = scalar_lea.hbm %s1274_s21, %s715_s7  ;;  %s872_s16 = scalar_lea.vmem %s1198_s13, 64 }
  0xe5   : > { %p873_p8 = scmp.ne.s32.totalorder %s1198_s13, %s872_s16  ;;  %p879_p13 = scmp.lt.s32.totalorder %s1198_s13, %s877_s19 }
  0xe6   : > { %p880_p4 = scmp.lt.s32.totalorder %s878_s12, %s872_s16 }
  0xe7   : > { %p874_p0 = pnand %p873_p8, %p1275_p12 }
  0xe8   : > { %p881_p5 = por %p880_p4, %p879_p13 }
  0xe9   : > { %p875_p6 = pneg %p874_p0 }
  0xeb   : > { %p882_p7 = pnand %p881_p5, %p875_p6 }
 0x140   : > { %v386_v24 = vpop.permute.xlu0 %385  ;;  %v372_v25 = vpop.permute.xlu1 %371 }
 0x141   : > { %v387_v26 = vrot.slane %v386_v24, 4  ;;  %v373_v27 = vrot.slane %v372_v25, 4 }
 0x143   : > { %v389_v28 = vsel %vm388_vm1, %v386_v24, %v387_v26  ;;  %v375_v29 = vsel %vm374_vm2, %v372_v25, %v373_v27 }
 0x144   : > { %391 = vst [vmem:[#allocation2 + $0xc] sm:$0xf] %v389_v28  ;;  %377 = vst [vmem:[#allocation2 + $0x4] sm:$0xf] %v375_v29  ;;  %v400_v30 = vpop.permute.xlu0 %399  ;;  %v379_v31 = vpop.permute.xlu1 %378 }
 0x145   : > { %v401_v32 = vrot.slane %v400_v30, 4  ;;  %v380_v33 = vrot.slane %v379_v31, 4 }
 0x147   : > { %v403_v34 = vsel %vm402_vm3, %v400_v30, %v401_v32  ;;  %v382_v35 = vsel %vm381_vm4, %v379_v31, %v380_v33 }
 0x148   : > { %405 = vst [vmem:[#allocation2 + $0x14] sm:$0xf] %v403_v34  ;;  %384 = vst [vmem:[#allocation2 + $0x8] sm:$0xf] %v382_v35  ;;  %v414_v36 = vpop.permute.xlu0 %413  ;;  %v393_v37 = vpop.permute.xlu1 %392 }
 0x149   : > { %v415_v38 = vrot.slane %v414_v36, 4  ;;  %v394_v39 = vrot.slane %v393_v37, 4 }
 0x14b   : > { %v417_v40 = vsel %vm416_vm5, %v414_v36, %v415_v38  ;;  %v396_v41 = vsel %vm395_vm6, %v393_v37, %v394_v39  ;;  %v837_v42 = vld [vmem:[#allocation2] sm:$0xff]  }
 0x14c   : > { %419 = vst [vmem:[#allocation2 + $0x1c] sm:$0xf] %v417_v40  ;;  %398 = vst [vmem:[#allocation2 + $0x10] sm:$0xf] %v396_v41  ;;  %v407_v43 = vpop.permute.xlu1 %406  ;;  %728 = vmatpush3.bf16.msra.mxu0 %v837_v42 }
 0x14d   : > { %v408_v44 = vrot.slane %v407_v43, 4  ;;  %729 = vmatprep.subr.bf16.mxu0 %v974_v22 }
 0x14f   : > { %v410_v45 = vsel %vm409_vm7, %v407_v43, %v408_v44  ;;  %v838_v46 = vld [vmem:[#allocation2 + $0x8] sm:$0xff]  }
 0x150   : > { %412 = vst [vmem:[#allocation2 + $0x18] sm:$0xf] %v410_v45  ;;  %v421_v47 = vpop.permute.xlu1 %420  ;;  %730 = vmatpush3.bf16.msra.mxu0 %v838_v46 }
 0x151   : > { %v422_v48 = vrot.slane %v421_v47, 4  ;;  %731 = vmatprep.subr.bf16.mxu0 %v974_v22 }
 0x153   : > { %v424_v49 = vsel %vm423_vm8, %v421_v47, %v422_v48  ;;  %v839_v50 = vld [vmem:[#allocation2 + $0x10] sm:$0xff]  }
 0x154   : > { %426 = vst [vmem:[#allocation2 + $0x20] sm:$0xf] %v424_v49  ;;  %732 = vmatpush3.bf16.msra.mxu0 %v839_v50  ;;  %v571_v1 = vpop.permute.xlu1 %570 }
 0x155   : > { %733 = vmatprep.subr.bf16.mxu0 %v974_v22 }
 0x157   : > { %v840_v51 = vld [vmem:[#allocation2 + $0x18] sm:$0xff]  }
 0x158   : > { %734 = vmatpush3.bf16.msra.mxu0 %v840_v51 }
 0x159   : > { %735 = vmatprep.subr.bf16.mxu0 %v974_v22  ;;  %v519_v63 = vpop.permute.xlu0 %518 }
 0x15b   : > { %v841_v52 = vld [vmem:[#allocation2 + $0x20] ss:$0 sps:$4 sm:$0xff]  }
 0x15c   : > { %v470_v53 = vsel %vm468_vm9, %v841_v52, 0 }
 0x15d   : > { %736 = vmatpush3.bf16.msra.mxu0 %v470_v53  ;;  %v573_v0 = vpop.permute.xlu0 %572 }
 0x15e   : > { %v575_v3 = vsel %vm395_vm6, %v571_v1, %v573_v0 }
 0x160   : > { %738 = vmatmul.mubr.msk.bf16.vlgmr.msra.gmra.mrb[0].mxu0 %vm464_vm10, %v427_v54 }
 0x233   : > { %v506_v55 = vpop.f32.mrb[0].mxu0 }
 0x234   : > { %v512_v56 = vmax.f32 %v506_v55, 0.0  ;;  %v739_v57 = vpop.f32.mrb[1].mxu0 }
 0x235   : > { %v509_v58 = vpop.f32.mrb[2].mxu0 }
 0x236   : > { %v514_v59 = vpack.c.bf16 %v512_v56, %v512_v56  ;;  %v740_v60 = vpop.f32.mrb[3].mxu0 }
 0x238   : > { %v526_v61 = vsel %vm468_vm9, %v514_v59, 0 }
 0x239   : > { %742 = vmatpush3.bf16.msra.mxu1 %v526_v61 }
 0x23c   : > { %744 = vmatmul.mubr.msk.bf16.vlgmr.msra.gmra.mrb[0].mxu1 %vm521_vm11, %v513_v62 }
 0x30f   : > { %v562_v2 = vpop.f32.mrb[0].mxu1 }
 0x310   : > { %v563_v4 = vadd.f32 %v562_v2, %v519_v63  ;;  %v745_v5 = vpop.f32.mrb[1].mxu1 }
 0x311   : > { %v565_v6 = vpop.f32.mrb[2].mxu1 }
 0x312   : > { %v577_v7 = vadd.f32 %v575_v3, %v563_v4  ;;  %v746_v8 = vpop.f32.mrb[3].mxu1 }
 0x314   : > { %578 = vst [vmem:[%s325_s14] sm:$0xf] %v577_v7 }
 0x315   : > { %885 = shalt.err (!%p882_p7)
}
 0x316   : > { %s886_s11 = scalar_lea.hbm %s1196_s28, 64  ;;  %s890_s9 = scalar_lea.hbm %s1274_s21, 512 }
 0x317   : > { %p887_p10 = scmp.ne.s32.totalorder %s1196_s28, %s886_s11  ;;  %p891_p2 = scmp.lt.u32.totalorder %s1196_s28, %s1274_s21 }
 0x318   : > { %p892_p3 = scmp.lt.u32.totalorder %s890_s9, %s886_s11  ;;  %p894_p8 = scmp.lt.u32.totalorder %s886_s11, %s1196_s28 }
 0x319   : > { %p888_p11 = pnand %p887_p10, %p1275_p12 }
 0x31a   : > { %p893_p9 = por %p892_p3, %p891_p2 }
 0x31b   : > { %p889_p1 = pneg %p888_p11 }
 0x31c   : > { %p895_p0 = por %p894_p8, %p893_p9 }
 0x31e   : > { %p896_p6 = pnand %p895_p0, %p889_p1 }
 0x320   : > { %899 = shalt.err (!%p896_p6)
}
 0x321   : > { %749 = dma.vmem_to_hbm [thread:$0]  (%p1275_p12), %s1198_s13, 64, %s1196_s28, %s580_s27  }
 0x322 PF: > { %s1276_s24 = sld [smem:[#allocation9_spill]]  ;;  %p760_p13 = scmp.ge.s32.totalorder %s970_s8, 2 }
 0x323   : > { %p1277_p4 = scmp.ne.s32.totalorder %s1270_s20, 0 }
 0x325   : > { %p756_p5 = pnand %p760_p13, %p1277_p4 }
 0x328   : > { %s607_s10 = sand.u32 1, %s1276_s24  }
 0x329   : > { %s608_s16 = scalar_lea.sflag [#allocation5], %s607_s10 }
 0x32a   : > { %937 = dma.done.wait (!%p756_p5), %s608_s16, 64  }
 0x32b   : > { %939 = vsyncadd (!%p756_p5), %s608_s16, 4294967232  ;;  %s23_s8 = sadd.s32 1, %s970_s8   ;;  %s1278_s17 = sld [smem:[#allocation10_spill]] }
 0x32c   : > { %p20_p7 = scmp.ge.s32.totalorder %s23_s8, 10   ;;  %s1279_s13 = sld [smem:[#allocation11_spill]] }
 0x32d   : > { %s1280_s24 = smov %s946_s25  ;;  %s1281_s25 = smov %s950_s26 }
 0x32e   : > { %s1282_s26 = smov %s1103_s22  ;;  %s1283_s27 = smov %s962_s29 }
 0x32f   : > { %s1284_s28 = smov %s966_s30  ;;  %22 = sbr.rel (!%p20_p7) target bundleno = 9 (0x9), region = 96 }
 0x331   : > { %s1285_s29 = smov %s1278_s17 }
 0x332   : > { %s1286_s30 = smov %s1279_s13 }
 0x336   :  { %613 = vsyncpa [#allocation4], 1 }
 0x337   :  { %615 = vsyncpa [#allocation4 + $0x1], 1 }
 0x338   :  { %616 = vsyncpa [#allocation5], 1 }
 0x339   :  { %618 = vsyncpa [#allocation5 + $0x1], 1 }

</bundles_post_ra>
